<compile_context>
chip_gen: v6e
topology: v6e:2x2x1
jax: 0.10.0
libtpu: 0.0.40
codegen_flags: <defaults>
</compile_context>

<pallas_src>
import functools

import jax
import jax.numpy as jnp
from jax.experimental import pallas as pl
from jax.experimental.pallas import tpu as pltpu


# ---------------------------------------------------------------------------
# helpers
# ---------------------------------------------------------------------------
def _round_up(x, m):
    return (x + m - 1) // m * m


def _dropout_threshold_i32(p):
    """Signed-int32 threshold t such that P(bits_i32 >= t) == 1 - p."""
    t = int(round(p * (1 << 32))) - (1 << 31)
    return max(-(1 << 31), min(t, (1 << 31) - 1))


def _dropout_bits(key, b, o_pad):
    """Uniform 32-bit random words, viewed as int32 for the in-kernel compare."""
    u = jax.random.bits(key, (b, o_pad), dtype=jnp.uint32)
    return jax.lax.bitcast_convert_type(u, jnp.int32)


# ---------------------------------------------------------------------------
# kernel
# ---------------------------------------------------------------------------
def pfc_kernel(x_ref, w_ref, gamma_ref, beta_ref, bits_ref, o_ref, acc_ref, *,
               dropout, eps, keep_thr, keep_scale):
    k = pl.program_id(1)                       # reduction (F) axis, innermost

    @pl.when(k == 0)
    def _init():
        acc_ref[...] = jnp.zeros_like(acc_ref)

    # bf16 x bf16 -> f32 accumulate on the MXU.
    acc_ref[...] += jnp.dot(x_ref[...], w_ref[...],
                            preferred_element_type=jnp.float32)

    @pl.when(k == pl.num_programs(1) - 1)
    def _finalize():
        y = acc_ref[...]                                        # (B, TO) f32
        # BatchNorm1d, training mode: per-feature batch mean / biased variance.
        mean = jnp.mean(y, axis=0, keepdims=True)
        var = jnp.mean((y - mean) ** 2, axis=0, keepdims=True)
        # Folded affine: one FMA over the (B, TO) tile.
        s = gamma_ref[...] * jax.lax.rsqrt(var + eps)
        t = beta_ref[...] - mean * s
        z = y * s + t
        if dropout > 0.0:
            # Single compare + select; 1/(1-p) scale folded into the select.
            keep = bits_ref[...] >= jnp.int32(keep_thr)
            z = jnp.where(keep, z * jnp.float32(keep_scale), 0.0)
        # ReLU + lane-dense (O_pad multiple of 128) unmasked store.
        o_ref[...] = jnp.maximum(z, 0.0)


# ---------------------------------------------------------------------------
# one-time parameter preparation (init-time, NOT per forward call)
# ---------------------------------------------------------------------------
def prepare_params(w, gamma, beta, b=None, *, tk_max=2048):
    """Transpose + pad + cast the parameters once.

    w     : (out_channels, in_channels)  PyTorch nn.Linear layout
    gamma : (out_channels,)  BatchNorm1d weight
    beta  : (out_channels,)  BatchNorm1d bias
    b     : (out_channels,)  Linear bias -- accepted for API parity but dropped:
            under training-mode BN the batch-mean subtraction cancels it exactly.
    tk_max: max F-tile (multiple of 128).  Size it to the per-generation scoped
            VMEM budget (v5e 16 MiB default, v6e 32 MiB, v7x 32 MiB of 64 MiB).
    """
    del b
    assert tk_max % 128 == 0
    out_c, in_c = w.shape
    f_pad128 = _round_up(in_c, 128)
    if f_pad128 <= tk_max:
        tk, f_pad = f_pad128, f_pad128
    else:
        tk, f_pad = tk_max, _round_up(in_c, tk_max)
    o_pad = _round_up(out_c, 128)
    to = 256 if o_pad % 256 == 0 else 128      # 256-wide N tile feeds v6e/v7x MXU

    wt = jnp.pad(jnp.asarray(w, jnp.bfloat16).T,
                 ((0, f_pad - in_c), (0, o_pad - out_c)))       # (F_pad, O_pad) bf16
    g = jnp.pad(jnp.asarray(gamma, jnp.float32), (0, o_pad - out_c)).reshape(1, o_pad)
    be = jnp.pad(jnp.asarray(beta, jnp.float32), (0, o_pad - out_c)).reshape(1, o_pad)
    dims = dict(F=in_c, F_pad=f_pad, O=out_c, O_pad=o_pad, tk=tk, to=to)
    return wt, g, be, dims


# ---------------------------------------------------------------------------
# forward wrapper
# ---------------------------------------------------------------------------
def pfc_forward(x, wt_pad, gamma_pad, beta_pad, dims, *, dropout, key, eps=1e-5):
    if isinstance(x, tuple):
        x = x[-1]
    B = x.shape[0]
    F, F_pad = dims["F"], dims["F_pad"]
    O, O_pad = dims["O"], dims["O_pad"]
    tk, to = dims["tk"], dims["to"]

    xf = x.reshape(B, -1)
    assert xf.shape[1] == F, f"in_channels mismatch: {xf.shape[1]} vs {F}"
    x_pad = jnp.pad(xf.astype(jnp.bfloat16), ((0, 0), (0, F_pad - F)))

    bits = _dropout_bits(key, B, O_pad)                     # (B, O_pad) int32
    keep_thr = _dropout_threshold_i32(float(dropout))
    keep_scale = 1.0 / (1.0 - dropout) if dropout < 1.0 else 0.0

    grid = (O_pad // to, F_pad // tk)        # (parallel O tiles, reduction K tiles)
    kernel = functools.partial(pfc_kernel, dropout=float(dropout), eps=float(eps),
                               keep_thr=keep_thr, keep_scale=float(keep_scale))

    out = pl.pallas_call(
        kernel,
        out_shape=jax.ShapeDtypeStruct((B, O_pad), jnp.float32),
        grid_spec=pltpu.PrefetchScalarGridSpec(
            num_scalar_prefetch=0,
            grid=grid,
            in_specs=[
                pl.BlockSpec((B, tk), lambda o, k: (0, k)),    # x  (bf16)
                pl.BlockSpec((tk, to), lambda o, k: (k, o)),   # w^T (bf16, pre-padded)
                pl.BlockSpec((1, to), lambda o, k: (0, o)),    # gamma
                pl.BlockSpec((1, to), lambda o, k: (0, o)),    # beta
                pl.BlockSpec((B, to), lambda o, k: (0, o)),    # dropout bits
            ],
            out_specs=pl.BlockSpec((B, to), lambda o, k: (0, o)),
            scratch_shapes=[pltpu.VMEM((B, to), jnp.float32)],  # f32 accumulator
        ),
        compiler_params=pltpu.CompilerParams(
            dimension_semantics=("parallel", "arbitrary"),
            vmem_limit_bytes=64 * 1024 * 1024,
        ),
    )(x_pad, wt_pad, gamma_pad, beta_pad, bits)
    return out[:, :O]


# ---------------------------------------------------------------------------
# pure-JAX reference (same bf16 cast, same dropout mask)
# ---------------------------------------------------------------------------
def pfc_reference(x, w, b, gamma, beta, *, dropout, key, o_pad, eps=1e-5):
    B = x.shape[0]
    xf = x.reshape(B, -1).astype(jnp.bfloat16)
    y = jnp.dot(xf, jnp.asarray(w, jnp.bfloat16).T,
                preferred_element_type=jnp.float32)
    y = y + jnp.asarray(b, jnp.float32)[None, :]        # cancelled by BN anyway
    mean = jnp.mean(y, axis=0, keepdims=True)
    var = jnp.mean((y - mean) ** 2, axis=0, keepdims=True)
    z = (y - mean) * jax.lax.rsqrt(var + eps) * gamma[None, :] + beta[None, :]
    if dropout > 0:
        bits = _dropout_bits(key, B, o_pad)[:, : z.shape[1]]
        keep = bits >= jnp.int32(_dropout_threshold_i32(float(dropout)))
        z = jnp.where(keep, z / (1.0 - dropout), 0.0)
    return jnp.maximum(z, 0.0)


if __name__ == "__main__":
    # Shapes consistent with the module: x (B, C, H, W) flattened to (B, C*H*W);
    # Linear(in_channels=C*H*W, out_channels=32), dropout=0.5.
    B, C, H, W = 8, 4, 16, 16
    in_channels = C * H * W          # 1024
    out_channels = 32
    dropout = 0.5

    root = jax.random.PRNGKey(0)
    kx, kw, kb, kdrop = jax.random.split(root, 4)

    x = jax.random.normal(kx, (B, C, H, W), dtype=jnp.float32)
    bound = 1.0 / (in_channels ** 0.5)
    w = jax.random.uniform(kw, (out_channels, in_channels),
                           minval=-bound, maxval=bound, dtype=jnp.float32)
    b = jax.random.uniform(kb, (out_channels,),
                           minval=-bound, maxval=bound, dtype=jnp.float32)
    gamma = jnp.ones((out_channels,), jnp.float32)    # BatchNorm1d weight
    beta = jnp.zeros((out_channels,), jnp.float32)    # BatchNorm1d bias

    # tk_max=512 so the toy shape exercises the F-reduction grid (2 K-steps);
    # for production shapes keep the default (bigger blocks, sized to VMEM).
    wt_pad, gamma_pad, beta_pad, dims = prepare_params(w, gamma, beta, b, tk_max=512)

    out = pfc_forward(x, wt_pad, gamma_pad, beta_pad, dims,
                      dropout=dropout, key=kdrop)
    out = jax.block_until_ready(out)

    ref = pfc_reference(x, w, b, gamma, beta, dropout=dropout, key=kdrop,
                        o_pad=dims["O_pad"])

    assert out.shape == (B, out_channels)
    assert bool(jnp.all(out >= 0.0))                 # ReLU output non-negative
    assert bool(jnp.all(jnp.isfinite(out)))
    assert bool(jnp.allclose(out, ref, rtol=1e-2, atol=1e-2)), \
        float(jnp.max(jnp.abs(out - ref)))
    print("KERNEL_OK")
</pallas_src>

<mosaic_0001>
module attributes {stable_mosaic.version = 11 : i64} {
  func.func @pfc_kernel(%arg0: i32, %arg1: i32, %arg2: memref<8x512xbf16, #tpu.memory_space<vmem>>, %arg3: memref<512x128xbf16, #tpu.memory_space<vmem>>, %arg4: memref<1x128xf32, #tpu.memory_space<vmem>>, %arg5: memref<1x128xf32, #tpu.memory_space<vmem>>, %arg6: memref<8x128xi32, #tpu.memory_space<vmem>>, %arg7: memref<8x128xf32, #tpu.memory_space<vmem>>, %arg8: memref<8x128xf32, #tpu.memory_space<vmem>>) attributes {dimension_semantics = [#tpu.dimension_semantics<parallel>, #tpu.dimension_semantics<arbitrary>], iteration_bounds = array<i64: 1, 2>, scalar_prefetch = 0 : i64, scratch_operands = 1 : i64, tpu.core_type = #tpu.core_type<tc>, window_params = [{transform_indices = @transform_0, window_bounds = array<i64: 8, 512>}, {transform_indices = @transform_1, window_bounds = array<i64: 512, 128>}, {transform_indices = @transform_2, window_bounds = array<i64: 1, 128>}, {transform_indices = @transform_3, window_bounds = array<i64: 1, 128>}, {transform_indices = @transform_4, window_bounds = array<i64: 8, 128>}, {transform_indices = @transform_5, window_bounds = array<i64: 8, 128>}]} {
    %c0_i32 = arith.constant 0 : i32
    %0 = arith.cmpi eq, %arg1, %c0_i32 : i32
    %1 = arith.extui %0 : i1 to i32
    %c0_i32_0 = arith.constant 0 : i32
    %2 = arith.cmpi ne, %1, %c0_i32_0 : i32
    scf.if %2 {
      %cst_9 = arith.constant 0.000000e+00 : f32
      %12 = vector.broadcast %cst_9 : f32 to vector<8x128xf32>
      %c0_10 = arith.constant 0 : index
      %c0_11 = arith.constant 0 : index
      %13 = vector.load %arg8[%c0_10, %c0_11] : memref<8x128xf32, #tpu.memory_space<vmem>>, vector<8x128xf32>
      tpu.vector_store %arg8[%c0_10, %c0_11], %12 {strides = array<i32>} : memref<8x128xf32, #tpu.memory_space<vmem>>, vector<8x128xf32>,
    } else {
    }
    %c0 = arith.constant 0 : index
    %c0_1 = arith.constant 0 : index
    %3 = vector.load %arg8[%c0, %c0_1] : memref<8x128xf32, #tpu.memory_space<vmem>>, vector<8x128xf32>
    %c0_2 = arith.constant 0 : index
    %c0_3 = arith.constant 0 : index
    %4 = vector.load %arg2[%c0_2, %c0_3] : memref<8x512xbf16, #tpu.memory_space<vmem>>, vector<8x512xbf16>
    %c0_4 = arith.constant 0 : index
    %c0_5 = arith.constant 0 : index
    %5 = vector.load %arg3[%c0_4, %c0_5] : memref<512x128xbf16, #tpu.memory_space<vmem>>, vector<512x128xbf16>
    %cst = arith.constant dense<0.000000e+00> : vector<8x128xf32>
    %6 = tpu.matmul %4, %5, %cst {dimension_numbers = #tpu.dot_dimension_numbers<[1], [0], [0], [1], [0, 0, 1, 1], [], []>} : vector<8x512xbf16>, vector<512x128xbf16>, vector<8x128xf32> -> vector<8x128xf32>
    %7 = arith.addf %3, %6 : vector<8x128xf32>
    %c0_6 = arith.constant 0 : index
    %c0_7 = arith.constant 0 : index
    %8 = vector.load %arg8[%c0_6, %c0_7] : memref<8x128xf32, #tpu.memory_space<vmem>>, vector<8x128xf32>
    tpu.vector_store %arg8[%c0_6, %c0_7], %7 {strides = array<i32>} : memref<8x128xf32, #tpu.memory_space<vmem>>, vector<8x128xf32>,
    %c1_i32 = arith.constant 1 : i32
    %9 = arith.cmpi eq, %arg1, %c1_i32 : i32
    %10 = arith.extui %9 : i1 to i32
    %c0_i32_8 = arith.constant 0 : i32
    %11 = arith.cmpi ne, %10, %c0_i32_8 : i32
    scf.if %11 {
      %c0_9 = arith.constant 0 : index
      %c0_10 = arith.constant 0 : index
      %12 = vector.load %arg8[%c0_9, %c0_10] : memref<8x128xf32, #tpu.memory_space<vmem>>, vector<8x128xf32>
      %cst_11 = arith.constant dense<0.000000e+00> : vector<128xf32>
      %13 = vector.multi_reduction <add>, %12, %cst_11 [0] : vector<8x128xf32> to vector<128xf32>
      %14 = vector.shape_cast %13 : vector<128xf32> to vector<1x128xf32>
      %cst_12 = arith.constant 8.000000e+00 : f32
      %15 = vector.broadcast %cst_12 : f32 to vector<1x128xf32>
      %16 = arith.divf %14, %15 : vector<1x128xf32>
      %17 = vector.broadcast %16 : vector<1x128xf32> to vector<8x128xf32>
      %18 = arith.subf %12, %17 : vector<8x128xf32>
      %19 = arith.mulf %18, %18 : vector<8x128xf32>
      %cst_13 = arith.constant dense<0.000000e+00> : vector<128xf32>
      %20 = vector.multi_reduction <add>, %19, %cst_13 [0] : vector<8x128xf32> to vector<128xf32>
      %21 = vector.shape_cast %20 : vector<128xf32> to vector<1x128xf32>
      %cst_14 = arith.constant 8.000000e+00 : f32
      %22 = vector.broadcast %cst_14 : f32 to vector<1x128xf32>
      %23 = arith.divf %21, %22 : vector<1x128xf32>
      %c0_15 = arith.constant 0 : index
      %c0_16 = arith.constant 0 : index
      %24 = vector.load %arg4[%c0_15, %c0_16] : memref<1x128xf32, #tpu.memory_space<vmem>>, vector<1x128xf32>
      %cst_17 = arith.constant 9.99999974E-6 : f32
      %25 = vector.broadcast %cst_17 : f32 to vector<1x128xf32>
      %26 = arith.addf %23, %25 : vector<1x128xf32>
      %27 = math.rsqrt %26 : vector<1x128xf32>
      %28 = arith.mulf %24, %27 : vector<1x128xf32>
      %c0_18 = arith.constant 0 : index
      %c0_19 = arith.constant 0 : index
      %29 = vector.load %arg5[%c0_18, %c0_19] : memref<1x128xf32, #tpu.memory_space<vmem>>, vector<1x128xf32>
      %30 = arith.mulf %16, %28 : vector<1x128xf32>
      %31 = arith.subf %29, %30 : vector<1x128xf32>
      %32 = vector.broadcast %28 : vector<1x128xf32> to vector<8x128xf32>
      %33 = arith.mulf %12, %32 : vector<8x128xf32>
      %34 = vector.broadcast %31 : vector<1x128xf32> to vector<8x128xf32>
      %35 = arith.addf %33, %34 : vector<8x128xf32>
      %c0_20 = arith.constant 0 : index
      %c0_21 = arith.constant 0 : index
      %36 = vector.load %arg6[%c0_20, %c0_21] : memref<8x128xi32, #tpu.memory_space<vmem>>, vector<8x128xi32>
      %c0_i32_22 = arith.constant 0 : i32
      %37 = vector.broadcast %c0_i32_22 : i32 to vector<8x128xi32>
      %38 = arith.cmpi sge, %36, %37 : vector<8x128xi32>
      %cst_23 = arith.constant 2.000000e+00 : f32
      %39 = vector.broadcast %cst_23 : f32 to vector<8x128xf32>
      %40 = arith.mulf %35, %39 : vector<8x128xf32>
      %cst_24 = arith.constant 0.000000e+00 : f32
      %41 = vector.broadcast %cst_24 : f32 to vector<8x128xf32>
      %42 = arith.select %38, %40, %41 : vector<8x128xi1>, vector<8x128xf32>
      %cst_25 = arith.constant 0.000000e+00 : f32
      %43 = vector.broadcast %cst_25 : f32 to vector<8x128xf32>
      %44 = arith.maximumf %42, %43 : vector<8x128xf32>
      %c0_26 = arith.constant 0 : index
      %c0_27 = arith.constant 0 : index
      %45 = vector.load %arg7[%c0_26, %c0_27] : memref<8x128xf32, #tpu.memory_space<vmem>>, vector<8x128xf32>
      tpu.vector_store %arg7[%c0_26, %c0_27], %44 {strides = array<i32>} : memref<8x128xf32, #tpu.memory_space<vmem>>, vector<8x128xf32>,
    } else {
    }
    return
  }
  func.func @transform_0(%arg0: i32, %arg1: i32) -> (i32, i32) {
    %c0_i32 = arith.constant 0 : i32
    %c0_i32_0 = arith.constant 0 : i32
    return %c0_i32, %arg1 : i32, i32
  }
  func.func @transform_1(%arg0: i32, %arg1: i32) -> (i32, i32) {
    %c0_i32 = arith.constant 0 : i32
    return %arg1, %arg0 : i32, i32
  }
  func.func @transform_2(%arg0: i32, %arg1: i32) -> (i32, i32) {
    %c0_i32 = arith.constant 0 : i32
    %c0_i32_0 = arith.constant 0 : i32
    return %c0_i32, %arg0 : i32, i32
  }
  func.func @transform_3(%arg0: i32, %arg1: i32) -> (i32, i32) {
    %c0_i32 = arith.constant 0 : i32
    %c0_i32_0 = arith.constant 0 : i32
    return %c0_i32, %arg0 : i32, i32
  }
  func.func @transform_4(%arg0: i32, %arg1: i32) -> (i32, i32) {
    %c0_i32 = arith.constant 0 : i32
    %c0_i32_0 = arith.constant 0 : i32
    return %c0_i32, %arg0 : i32, i32
  }
  func.func @transform_5(%arg0: i32, %arg1: i32) -> (i32, i32) {
    %c0_i32 = arith.constant 0 : i32
    %c0_i32_0 = arith.constant 0 : i32
    return %c0_i32, %arg0 : i32, i32
  }
}

</mosaic_0001>

<bundles_post_ra>
// kernel: tpu_custom_call.1
= control target key start
LH: loop header
LB: loop body
LE: loop exit
PB: predicated region body
PF: predicated region fallthrough
CT: control target
= control target key end

     0   :  { %s1523_s0 = inlined_call_operand.hbm [shape: bf16[8,1024], index: 0, kind: input, shape index: {}]   ;;  %s1524_s1 = inlined_call_operand.hbm [shape: bf16[1024,128], index: 1, kind: input, shape index: {}]   ;;  %s1525_s2 = inlined_call_operand.vmem [shape: f32[1,128], index: 2, kind: input, shape index: {}]   ;;  %s1526_s3 = inlined_call_operand.vmem [shape: f32[1,128], index: 3, kind: input, shape index: {}]   ;;  %s1527_s4 = inlined_call_operand.hbm [shape: s32[8,128], index: 4, kind: input, shape index: {}]   ;;  %s1528_s5 = inlined_call_operand.hbm [shape: f32[8,128], index: 5, kind: output, shape index: {}]  }
   0x1   :  { %1532 = sst [smem:[#allocation14_spill]] %s1523_s0 }
   0x2   :  { %10 = vsyncpa [#allocation4], 0 }
   0x3   :  { %12 = vsyncpa [#allocation4 + $0x1], 0 }
   0x4   :  { %13 = vsyncpa [#allocation7], 0 }
   0x5   :  { %15 = vsyncpa [#allocation7 + $0x1], 0 }
   0x6   :  { %16 = vsyncpa [#allocation5], 0  ;;  %s1308_s18 = smov 0   ;;  %s1310_s19 = smov 0  }
   0x7   :  { %s1312_s20 = smov 0   ;;  %s1314_s21 = smov 0  }
   0x8   :  { %s1316_s22 = smov 0   ;;  %s1318_s23 = smov 0  }
   0x9 LB: > { %s1337_s24 = sadd.s32 4294967295, %s1269_s23   ;;  %s41_s25 = sadd.s32 1, %s1257_s20  ;;  %s1269_s23 = sphi %s1318_s23, %s22_s23   ;;  %s1265_s22 = sphi %s1316_s22, %s1548_s22   ;;  %s1261_s21 = sphi %s1314_s21, %s1547_s21   ;;  %s1257_s20 = sphi %s1312_s20, %s1546_s20   ;;  %s1253_s19 = sphi %s1310_s19, %s1545_s19   ;;  %s1249_s18 = sphi %s1308_s18, %s1544_s18  }
   0xa   : > { %p48_p0 = scmp.ne.s32.totalorder %s1257_s20, %s1253_s19  ;;  %p54_p1 = scmp.ne.s32.totalorder %s1253_s19, %s1249_s18 }
   0xb   : > { %p1529_p2 = scmp.eq.s32.totalorder %s1337_s24, 0  ;;  %p879_p3 = scmp.ge.s32.totalorder %s1269_s23, 1 }
   0xc   : > { %p197_p4 = scmp.lt.s32.totalorder %s1269_s23, 3  ;;  %s1271_s28 = smov [#allocation8]  }
   0xd   : > { %p1348_p5 = por %p1529_p2, %p54_p1  ;;  %s224_s29 = sshll.u32 %s1271_s28, 4  ;;  %s225_s29 = int_to_ptr.vmem [resolvable:$true] %s224_s29 }
   0xe   : > { %p1352_p6 = pnand %p879_p3, %p197_p4  ;;  %p49_p8 = scmp.eq.s32.totalorder %s1269_s23, 0 }
   0xf   : > { %s1533_s26 = scalar_select %p1348_p5, 1, 0 }
  0x10   : > { %s1534_s27 = scalar_select %p1352_p6, 1, 0 }
  0x11   : > { %p994_p7 = pneg %p1352_p6  ;;  %s31_s6 = sadd.s32 1, %s1265_s22 }
  0x12   : > { %p1366_p10 = scmp.ge.s32.totalorder %s31_s6, 2  ;;  %p1373_p11 = por %p49_p8, %p48_p0 }
  0x13   : > { %p1361_p9 = pnand %p994_p7, %p1529_p2  ;;  %p1006_p12 = scmp.lt.s32.totalorder %s1269_s23, 2 }
  0x14   : > { %s1112_s9 = scalar_lea.vmem %s225_s29, 128  ;;  %p1120_p7 = scmp.lt.s32.totalorder %s225_s29, %s225_s29 }
  0x15   : > { %p1103_p13 = pneg %p1361_p9  ;;  %p1113_p1 = scmp.ne.s32.totalorder %s225_s29, %s1112_s9 }
  0x16   : > { %p1121_p2 = scmp.lt.s32.totalorder %s1112_s9, %s1112_s9 }
  0x17   : > { %p1115_p3 = pnand %p1113_p1, %p1103_p13 }
  0x18   : > { %p1122_p5 = por %p1121_p2, %p1120_p7 }
  0x19   : > { %p1116_p4 = pneg %p1115_p3 }
  0x1b   : > { %p1123_p6 = pnand %p1122_p5, %p1116_p4 }
  0x1d   : > { %1126 = shalt.err (!%p1123_p6)
}
  0x1e   : > { %997 = dma.hbm_to_vmem [thread:$0]  (!%p1361_p9), %s1527_s4, 128, %s225_s29, [#allocation7]  }
  0x1f   : > { %s1550_s6 = smov (%p1366_p10, %s31_s6), 0  ;;  %s1390_s12 = sand.u32 1, %s1257_s20  }
  0x20   : > { %s936_s13 = sshll.u32 %s1265_s22, 8  ;;  %s38_s14 = ssub.s32 %s1265_s22, %s1550_s6 }
  0x21   : > { %p39_p0 = scmp.eq.s32.totalorder %s38_s14, 0  ;;  %s884_s15 = sshll.u32 %s1390_s12, 4 }
  0x22   : > { %s1538_s0 = sld [smem:[#allocation14_spill]]  ;;  %s239_s29 = scalar_lea.vmem [#allocation3], %s884_s15 }
  0x23   : > { %s1402_s28 = scalar_select %p39_p0, %s1257_s20, %s41_s25  }
  0x24   : > { %s247_s30 = sshll.u32 %s239_s29, 4  ;;  %p1408_p2 = pnand %p1006_p12, %p1373_p11  ;;  %s248_s30 = int_to_ptr.vmem [resolvable:$true] %s247_s30 }
  0x25   : > { %s887_s9 = sshll.u32 %s1390_s12, 8  ;;  %s236_s10 = scalar_lea.sflag [#allocation4], %s1390_s12 }
  0x26   : > { %p1129_p5 = pneg %p1408_p2  ;;  %s1140_s11 = scalar_lea.vmem %s248_s30, 256 }
  0x27   : > { %p1141_p6 = scmp.ne.s32.totalorder %s248_s30, %s1140_s11  ;;  %s1272_s25 = smov [#allocation3]  }
  0x28   : > { %s245_s18 = scalar_lea.hbm %s1538_s0, %s936_s13  ;;  %s1145_s8 = sshll.u32 %s1272_s25, 4  ;;  %s1146_s8 = int_to_ptr.vmem [resolvable:$false] %s1145_s8 }
  0x29   : > { %p1143_p8 = pnand %p1141_p6, %p1129_p5  ;;  %s1147_s13 = scalar_lea.vmem %s1146_s8, 512 }
  0x2a   : > { %p1148_p10 = scmp.lt.s32.totalorder %s248_s30, %s1146_s8  ;;  %p1149_p11 = scmp.lt.s32.totalorder %s1147_s13, %s1140_s11 }
  0x2b   : > { %p1144_p9 = pneg %p1143_p8 }
  0x2c   : > { %p1150_p12 = por %p1149_p11, %p1148_p10 }
  0x2e   : > { %p1151_p13 = pnand %p1150_p12, %p1144_p9 }
  0x30   : > { %1154 = shalt.err (!%p1151_p13)
}
  0x31   : > { %1001 = dma.hbm_to_vmem [thread:$0]  (!%p1408_p2), %s245_s18, 256, %s248_s30, %s236_s10  }
  0x32   : > { %s937_s12 = sshll.u32 %s1265_s22, 12  ;;  %s258_s14 = scalar_lea.vmem [#allocation6], %s887_s9 }
  0x33   : > { %s266_s15 = sshll.u32 %s258_s14, 4  ;;  %s254_s16 = sand.u32 1, %s1269_s23   ;;  %s267_s15 = int_to_ptr.vmem [resolvable:$true] %s266_s15 }
  0x34   : > { %s265_s25 = scalar_lea.hbm %s1524_s1, %s937_s12  ;;  %s255_s8 = scalar_lea.sflag [#allocation7], %s254_s16 }
  0x35   : > { %s1168_s11 = scalar_lea.vmem %s267_s15, 4096  ;;  %s1273_s13 = smov [#allocation6]  }
  0x36   : > { %p1169_p1 = scmp.ne.s32.totalorder %s267_s15, %s1168_s11  ;;  %s1173_s0 = sshll.u32 %s1273_s13, 4  ;;  %s1174_s0 = int_to_ptr.vmem [resolvable:$false] %s1173_s0 }
  0x37   : > { %s1175_s18 = scalar_lea.vmem %s1174_s0, 8192  ;;  %p1176_p7 = scmp.lt.s32.totalorder %s267_s15, %s1174_s0 }
  0x38   : > { %p1171_p3 = pnand %p1169_p1, %p1129_p5  ;;  %p1177_p0 = scmp.lt.s32.totalorder %s1175_s18, %s1168_s11 }
  0x3a   : > { %p1172_p4 = pneg %p1171_p3  ;;  %p1178_p6 = por %p1177_p0, %p1176_p7 }
  0x3c   : > { %p1179_p8 = pnand %p1178_p6, %p1172_p4 }
  0x3e   : > { %1182 = shalt.err (!%p1179_p8)
}
  0x3f   : > { %s1274_s30 = smov 64   ;;  %s1275_s9 = smov 4  }
  0x40   : > { %1004 = dma.hbm_to_vmem [thread:$0]  (!%p1408_p2), %s265_s25, 4096, %s267_s15, %s255_s8, %s1274_s30, %s1274_s30, %s1275_s9  }
  0x41   : > { %p1540_p9 = scmp.ne.s32.totalorder %s1534_s27, 0 }
  0x42   : > { %s280_s10 = sand.u32 (!%p1540_p9), 1, %s1253_s19   ;;  %p1541_p5 = scmp.ne.s32.totalorder (!%p1540_p9), %s1533_s26, 0 }
  0x43   : > { %278 = sbr.rel (%p1540_p9) target bundleno = 411 (0x19b), region = 40  ;;  %s891_s12 = sshll.u32 (!%p1540_p9), %s280_s10, 4 }
  0x44   : > { %s281_s14 = scalar_lea.sflag (!%p1540_p9), [#allocation4], %s280_s10  ;;  %s1434_s16 = scalar_lea.vmem (!%p1540_p9), [#allocation3], %s891_s12 }
  0x48   : > { %1232 = dma.done.wait (%p1541_p5), %s281_s14, 256  }
  0x49   : > { %1234 = vsyncadd (%p1541_p5), %s281_s14, 4294967040  ;;  %s289_s0 = sand.u32 1, %s1337_s24   ;;  %s892_s7 = sshll.u32 %s280_s10, 8 }
  0x4a   : > { %s290_s15 = scalar_lea.sflag [#allocation7], %s289_s0  ;;  %s1441_s17 = scalar_lea.vmem [#allocation6], %s892_s7 }
  0x4b   : > { %1236 = dma.done.wait (%p1541_p5), %s290_s15, 4096  }
  0x4c   : > { %1238 = vsyncadd (%p1541_p5), %s290_s15, 4294963200  ;;  %p1542_p2 = scmp.eq.s32.totalorder %s1337_s24, 0 }
  0x4e   : > { %1240 = dma.done.wait (%p1542_p2), [#allocation7], 128   ;;  %p1543_p10 = pmov %p1542_p2 }
  0x4f   : > { %p894_p11 = scmp.ne.s32.totalorder %s1261_s21, 0 }
  0x50   : > { %1242 = vsyncadd (%p1543_p10), [#allocation7], 4294967168 }
  0x51   : > { %342 = sbr.rel (%p894_p11) target bundleno = 88 (0x58), region = 56 }
  0x56   : > { %v1276_v0 = vmov 0.0  }
  0x57   : > { %343 = vst [vmem:[#allocation2] sm:$0xff] %v1276_v0 }
  0x58 PF: > { %v1063_v1 = vld [vmem:[%s1441_s17 + $0x78] sm:$0xff]   ;;  %v1067_v5 = vld [vmem:[%s1441_s17 + $0x70] sm:$0xff]   ;;  %v1071_v9 = vld [vmem:[%s1441_s17 + $0x68] sm:$0xff]   ;;  %p931_p12 = scmp.ne.s32.totalorder %s1261_s21, 1 }
  0x59   : > { %v1064_v2 = vld [vmem:[%s1441_s17 + $0xf8] sm:$0xff]   ;;  %938 = vmatprep.subr.bf16.mxu0 %v1063_v1  ;;  %v1068_v6 = vld [vmem:[%s1441_s17 + $0xf0] sm:$0xff]   ;;  %v1072_v10 = vld [vmem:[%s1441_s17 + $0xe8] sm:$0xff]  }
  0x5a   : > { %v1065_v3 = vld [vmem:[%s1441_s17 + $0x38] sm:$0xff]   ;;  %960 = vmatprep.subr.bf16.mxu1 %v1064_v2  ;;  %v1069_v7 = vld [vmem:[%s1441_s17 + $0x30] sm:$0xff]   ;;  %v1073_v11 = vld [vmem:[%s1441_s17 + $0x28] sm:$0xff]  }
  0x5b   : > { %v1066_v4 = vld [vmem:[%s1441_s17 + $0xb8] sm:$0xff]   ;;  %939 = vmatpush3.bf16.msra.mxu0 %v1065_v3  ;;  %v1070_v8 = vld [vmem:[%s1441_s17 + $0xb0] sm:$0xff]   ;;  %v1074_v12 = vld [vmem:[%s1441_s17 + $0xa8] sm:$0xff]  }
  0x5c   : > { %961 = vmatpush3.bf16.msra.mxu1 %v1066_v4  ;;  %940 = vmatprep.subr.bf16.mxu0 %v1067_v5  ;;  %v1075_v13 = vld [vmem:[%s1441_s17 + $0x60] sm:$0xff]   ;;  %v1079_v17 = vld [vmem:[%s1441_s17 + $0x58] sm:$0xff]   ;;  %v1083_v21 = vld [vmem:[%s1441_s17 + $0x50] sm:$0xff]  }
  0x5d   : > { %962 = vmatprep.subr.bf16.mxu1 %v1068_v6  ;;  %v1076_v14 = vld [vmem:[%s1441_s17 + $0xe0] sm:$0xff]   ;;  %v1080_v18 = vld [vmem:[%s1441_s17 + $0xd8] sm:$0xff]   ;;  %v1084_v22 = vld [vmem:[%s1441_s17 + $0xd0] sm:$0xff]  }
  0x5e   : > { %v1077_v15 = vld [vmem:[%s1441_s17 + $0x20] sm:$0xff]   ;;  %v1081_v19 = vld [vmem:[%s1441_s17 + $0x18] sm:$0xff]   ;;  %v1085_v23 = vld [vmem:[%s1441_s17 + $0x10] sm:$0xff]  }
  0x5f   : > { %941 = vmatpush3.bf16.msra.mxu0 %v1069_v7  ;;  %v1078_v16 = vld [vmem:[%s1441_s17 + $0xa0] sm:$0xff]   ;;  %v1082_v20 = vld [vmem:[%s1441_s17 + $0x98] sm:$0xff]   ;;  %v1086_v24 = vld [vmem:[%s1441_s17 + $0x90] sm:$0xff]  }
  0x60   : > { %963 = vmatpush3.bf16.msra.mxu1 %v1070_v8  ;;  %942 = vmatprep.subr.bf16.mxu0 %v1071_v9  ;;  %v1087_v25 = vld [vmem:[%s1441_s17 + $0x48] sm:$0xff]   ;;  %v1091_v29 = vld [vmem:[%s1441_s17 + $0x40] sm:$0xff]   ;;  %v344_v45 = vld [vmem:[#allocation2] sm:$0xff] }
  0x61   : > { %964 = vmatprep.subr.bf16.mxu1 %v1072_v10  ;;  %v1088_v26 = vld [vmem:[%s1441_s17 + $0xc8] sm:$0xff]   ;;  %v1092_v30 = vld [vmem:[%s1441_s17 + $0xc0] sm:$0xff]  }
  0x62   : > { %v1089_v27 = vld [vmem:[%s1441_s17 + $0x8] sm:$0xff]   ;;  %v1093_v31 = vld [vmem:[%s1441_s17] sm:$0xff]  }
  0x63   : > { %943 = vmatpush3.bf16.msra.mxu0 %v1073_v11  ;;  %v1090_v28 = vld [vmem:[%s1441_s17 + $0x88] sm:$0xff]   ;;  %v1094_v32 = vld [vmem:[%s1441_s17 + $0x80] sm:$0xff]  }
  0x64   : > { %965 = vmatpush3.bf16.msra.mxu1 %v1074_v12  ;;  %944 = vmatprep.subr.bf16.mxu0 %v1075_v13  ;;  %v345_v33 = vld [vmem:[%s1434_s16] sm:$0xff]  ;;  %v346_v34 = vld [vmem:[%s1434_s16 + $0x8] sm:$0xff] }
  0x65   : > { %966 = vmatprep.subr.bf16.mxu1 %v1076_v14  ;;  %v895_v35 = vcombine.low %v345_v33, %v345_v33  ;;  %v896_v36 = vcombine.high %v345_v33, %v345_v33  ;;  %v897_v37 = vcombine.low %v346_v34, %v346_v34  ;;  %v898_v38 = vcombine.high %v346_v34, %v346_v34 }
  0x67   : > { %945 = vmatpush3.bf16.msra.mxu0 %v1077_v15  ;;  %649 = vmatprep.mubr.bf16.mxu0 %v896_v36 }
  0x68   : > { %967 = vmatpush3.bf16.msra.mxu1 %v1078_v16  ;;  %946 = vmatprep.subr.bf16.mxu0 %v1079_v17 }
  0x69   : > { %968 = vmatprep.subr.bf16.mxu1 %v1080_v18  ;;  %689 = vmatprep.mubr.bf16.mxu1 %v898_v38 }
  0x6b   : > { %947 = vmatpush3.bf16.msra.mxu0 %v1081_v19 }
  0x6c   : > { %969 = vmatpush3.bf16.msra.mxu1 %v1082_v20  ;;  %948 = vmatprep.subr.bf16.mxu0 %v1083_v21 }
  0x6d   : > { %970 = vmatprep.subr.bf16.mxu1 %v1084_v22 }
  0x6f   : > { %949 = vmatpush3.bf16.msra.mxu0 %v1085_v23 }
  0x70   : > { %971 = vmatpush3.bf16.msra.mxu1 %v1086_v24  ;;  %950 = vmatprep.subr.bf16.mxu0 %v1087_v25 }
  0x71   : > { %972 = vmatprep.subr.bf16.mxu1 %v1088_v26 }
  0x73   : > { %951 = vmatpush3.bf16.msra.mxu0 %v1089_v27 }
  0x74   : > { %973 = vmatpush3.bf16.msra.mxu1 %v1090_v28  ;;  %952 = vmatprep.subr.bf16.mxu0 %v1091_v29 }
  0x75   : > { %974 = vmatprep.subr.bf16.mxu1 %v1092_v30 }
  0x77   : > { %953 = vmatpush3.bf16.msra.mxu0 %v1093_v31 }
  0x78   : > { %975 = vmatpush3.bf16.msra.mxu1 %v1094_v32 }
  0x7a   : > { %650 = vmatmul.mubr.bf16.vlgmr.msra.gmra.mxu0 %v895_v35 }
  0x7b   : > { %690 = vmatmul.mubr.bf16.vlgmr.msra.gmra.mxu1 %v897_v37 }
 0x13a   : > { %v954_v39 = vpop.f32.mrf.mxu0 }
 0x13b   : > { %v976_v40 = vpop.f32.mrf.mxu1 }
 0x13c   : > { %v955_v41 = vpop.f32.mrf.mxu0 }
 0x13d   : > { %v977_v42 = vpop.f32.mrf.mxu1  ;;  %v956_v43 = vadd.f32 %v955_v41, %v954_v39 }
 0x13e   : > { %v978_v44 = vadd.f32 %v977_v42, %v976_v40  ;;  %v957_v46 = vpop.f32.mrf.mxu0 }
 0x13f   : > { %v979_v47 = vpop.f32.mrf.mxu1 }
 0x140   : > { %v692_v48 = vadd.f32 %v978_v44, %v956_v43  ;;  %v958_v49 = vpop.f32.mrf.mxu0  ;;  %702 = sbr.rel (%p931_p12) target bundleno = 396 (0x18c), region = 60 }
 0x141   : > { %v980_v50 = vpop.f32.mrf.mxu1 }
 0x142   : > { %v697_v51 = vadd.f32 %v692_v48, %v344_v45 }
 0x144   : > { %698 = vst [vmem:[#allocation2] sm:$0xff] %v697_v51 }
 0x145   : > { %v729_v6 = vlaneseq  ;;  %v721_v8 = vld [vmem:[%s1525_s2] sm:$0x1]  ;;  %v742_v18 = vld [vmem:[#allocation8] sm:$0xff] }
 0x146   : > { %v725_v12 = vld [vmem:[%s1526_s3] sm:$0x1]  ;;  %vm743_vm0 = vcmp.ge.s32.totalorder %v742_v18, 0 }
 0x147   : > { %v730_v7 = vshrl.u32 %v729_v6, 7 }
 0x149   : > { %v731_v9 = vsub.s32 0, %v730_v7 }
 0x14b   : > { %v703_v52 = vld [vmem:[#allocation2] sm:$0xff] }
 0x14c   : > { %v704_v53 = vrot.slane %v703_v52, 4 }
 0x14e   : > { %v705_v54 = vadd.f32 %v704_v53, %v703_v52 }
 0x150   : > { %v706_v55 = vrot.slane %v705_v54, 2 }
 0x152   : > { %v707_v56 = vadd.f32 %v706_v55, %v705_v54 }
 0x154   : > { %v708_v57 = vrot.slane %v707_v56, 1 }
 0x156   : > { %v709_v58 = vadd.f32 %v708_v57, %v707_v56 }
 0x158   : > { %v711_v59 = vmul.f32 0.125, %v709_v58 }
 0x15a   : > { %v712_v60 = vsub.f32 %v703_v52, %v711_v59 }
 0x15c   : > { %v713_v61 = vmul.f32 %v712_v60, %v712_v60 }
 0x15e   : > { %v714_v62 = vrot.slane %v713_v61, 4 }
 0x160   : > { %v715_v63 = vadd.f32 %v714_v62, %v713_v61 }
 0x162   : > { %v716_v0 = vrot.slane %v715_v63, 2 }
 0x164   : > { %v717_v1 = vadd.f32 %v716_v0, %v715_v63 }
 0x166   : > { %v718_v2 = vrot.slane %v717_v1, 1 }
 0x168   : > { %v719_v3 = vadd.f32 %v718_v2, %v717_v1 }
 0x16a   : > { %v720_v4 = vmul.f32 0.125, %v719_v3 }
 0x16c   : > { %v722_v5 = vadd.f32 1e-05, %v720_v4 }
 0x16e   : > { %1099 = vrsqrt.f32 %v722_v5 }
 0x17b   : > { %v1100_v10 = vpop.eup %1099 }
 0x17c   : > { %v724_v11 = vmul.f32 %v1100_v10, %v721_v8 }
 0x17e   : > { %v726_v13 = vmul.f32 %v724_v11, %v711_v59  ;;  %v732_v14 = vrot.slane %v724_v11, %v731_v9 }
 0x180   : > { %v727_v15 = vsub.f32 %v725_v12, %v726_v13  ;;  %v734_v16 = vmul.f32 %v732_v14, %v703_v52 }
 0x182   : > { %v739_v17 = vrot.slane %v727_v15, %v731_v9 }
 0x184   : > { %v741_v19 = vadd.f32 %v739_v17, %v734_v16 }
 0x186   : > { %v744_v20 = vmul.f32 2.0, %v741_v19 }
 0x188   : > { %v745_v21 = vsel %vm743_vm0, %v744_v20, 0.0 }
 0x189   : > { %v746_v22 = vmax.f32 %v745_v21, 0.0 }
 0x18b   : > { %747 = vst [vmem:[#allocation9] sm:$0xff] %v746_v22 }
 0x18c PF: > { %p1008_p13 = scmp.eq.s32.totalorder %s1337_s24, 1  ;;  %s1277_s25 = smov [#allocation9]  }
 0x18d   : > { %s757_s8 = sshll.u32 %s1277_s25, 4  ;;  %s758_s8 = int_to_ptr.vmem [resolvable:$true] %s757_s8 }
 0x18e   : > { %s1183_s11 = scalar_lea.vmem %s758_s8, 128  ;;  %p1190_p7 = scmp.lt.s32.totalorder %s758_s8, %s758_s8 }
 0x18f   : > { %p1184_p1 = scmp.ne.s32.totalorder %s758_s8, %s1183_s11  ;;  %p1191_p0 = scmp.lt.s32.totalorder %s1183_s11, %s1183_s11 }
 0x191   : > { %p1185_p3 = pnand %p1184_p1, %p1008_p13  ;;  %p1192_p6 = por %p1191_p0, %p1190_p7 }
 0x193   : > { %p1186_p4 = pneg %p1185_p3 }
 0x195   : > { %p1193_p8 = pnand %p1192_p6, %p1186_p4 }
 0x197   : > { %1196 = shalt.err (!%p1193_p8)
}
 0x198   : > { %991 = dma.vmem_to_hbm [thread:$0]  (%p1008_p13), %s758_s8, 128, %s1528_s5, [#allocation5]  }
 0x199   : > { %1244 = dma.done.wait (%p1008_p13), [#allocation5], 128  }
 0x19a   : > { %1246 = vsyncadd (%p1008_p13), [#allocation5], 4294967168 }
 0x19b PF: > { %s22_s23 = sadd.s32 1, %s1269_s23   ;;  %s1544_s18 = smov %s1253_s19 }
 0x19c   : > { %p19_p9 = scmp.ge.s32.totalorder %s22_s23, 4   ;;  %s1545_s19 = smov %s1257_s20 }
 0x19d   : > { %s1546_s20 = smov %s1402_s28  ;;  %s1547_s21 = smov %s1265_s22 }
 0x19e   : > { %s1548_s22 = smov %s1550_s6  ;;  %21 = sbr.rel (!%p19_p9) target bundleno = 9 (0x9), region = 110 }
 0x1a3   :  { %770 = vsyncpa [#allocation4], 1 }
 0x1a4   :  { %772 = vsyncpa [#allocation4 + $0x1], 1 }
 0x1a5   :  { %773 = vsyncpa [#allocation7], 1 }
 0x1a6   :  { %775 = vsyncpa [#allocation7 + $0x1], 1 }
 0x1a7   :  { %776 = vsyncpa [#allocation5], 1 }
 0x1a8   :  { %778 = vsyncpa [#allocation5 + $0x1], 1 }

</bundles_post_ra>
